<compile_context>
chip_gen: v7x
topology: tpu7x:2x2x1
jax: 0.10.0
libtpu: 0.0.40
codegen_flags: <defaults>
</compile_context>

<pallas_src>
import math

import jax
import jax.numpy as jnp
from jax import lax
from jax.experimental import pallas as pl
from jax.experimental.pallas import tpu as pltpu


def _make_flash_kernel(scale: float, has_mask: bool, fuse_proj: bool):
    """Build the flash-attention (+ optional fused out-projection) kernel body."""

    def kernel(*refs):
        idx = 0
        q_ref, k_ref, v_ref = refs[0], refs[1], refs[2]
        idx = 3
        if has_mask:
            m_ref = refs[idx]
            idx += 1
        if fuse_proj:
            w_ref = refs[idx]
            idx += 1
        o_ref = refs[idx]
        idx += 1
        q_sc, m_sc, l_sc, acc_sc = refs[idx:idx + 4]

        ki = pl.program_id(2)

        @pl.when(ki == 0)
        def _init():
            # Hoist the (compile-time) 1/sqrt(head_dim) scaling out of the kv
            # loop: the q block is resident across ki, so scale it once here.
            q_sc[...] = (q_ref[...] * scale).astype(q_sc.dtype)
            m_sc[...] = jnp.full_like(m_sc, -jnp.inf)
            l_sc[...] = jnp.zeros_like(l_sc)
            acc_sc[...] = jnp.zeros_like(acc_sc)

        # Contract the feature dim of q and k directly (no in-kernel k.T);
        # operands stay in their native dtype, accumulation is f32.
        s = jnp.einsum("bqd,bkd->bqk", q_sc[...], k_ref[...],
                       preferred_element_type=jnp.float32)     # (BT, TQ, TK) f32
        if has_mask:
            s = s + m_ref[...]                                  # mask already f32

        # Online (flash) softmax update.
        m_prev = m_sc[...]
        m_new = jnp.maximum(m_prev, s.max(axis=-1, keepdims=True))
        alpha = jnp.exp(m_prev - m_new)
        p = jnp.exp(s - m_new)
        l_sc[...] = alpha * l_sc[...] + p.sum(axis=-1, keepdims=True)
        acc_sc[...] = alpha * acc_sc[...] + jnp.einsum(
            "bqk,bkd->bqd", p.astype(v_ref.dtype), v_ref[...],
            preferred_element_type=jnp.float32)
        m_sc[...] = m_new

        @pl.when(ki == pl.num_programs(2) - 1)
        def _finalize():
            # Exact normalization (runs once per (b, qi) tile, so the precise
            # divide is free compared to the inner loop).
            attn = acc_sc[...] / l_sc[...]
            if fuse_proj:
                # w_ref holds W^T (pre-transposed once in the wrapper), so we
                # contract attn's feature dim with dim 0 of w_ref.
                out = lax.dot_general(
                    attn.astype(w_ref.dtype), w_ref[...],
                    dimension_numbers=(((2,), (0,)), ((), ())),
                    preferred_element_type=jnp.float32)
                o_ref[...] = out.astype(o_ref.dtype)
            else:
                o_ref[...] = attn.astype(o_ref.dtype)

    return kernel


def _pick_seq_tile(s: int) -> int:
    """Largest 'nice' tile <= 256 that divides s (falls back to full extent)."""
    for cand in (256, 128):
        if s % cand == 0:
            return cand
    return s


def custom_attention(q, k, v, w_out, head_dim, mask=None, *,
                     allow_bf16_mxu: bool = False, fuse_out_proj=None):
    """Pallas implementation of CustomAttention.forward.

    q, k, v : (B, S, d_model)
    w_out   : (d_model, d_model)  PyTorch Linear weight, applied as x @ W.T
    mask    : optional additive mask of shape (S,S), (1,S,S) or (B,S,S)
    """
    q = jnp.asarray(q)
    k = jnp.asarray(k)
    v = jnp.asarray(v)
    w_out = jnp.asarray(w_out)
    B, S, D = q.shape
    out_dtype = q.dtype
    scale = 1.0 / math.sqrt(head_dim)

    # Optional: feed the MXU bf16 operands (and halve q/k/v HBM traffic).
    if allow_bf16_mxu and q.dtype == jnp.float32:
        q = q.astype(jnp.bfloat16)
        k = k.astype(jnp.bfloat16)
        v = v.astype(jnp.bfloat16)
        w_out = w_out.astype(jnp.bfloat16)

    compute_dtype = q.dtype
    itemsize = jnp.dtype(compute_dtype).itemsize

    # Pre-transpose the out-projection weight once (hoisted out of the kernel).
    w_t = w_out.T

    if fuse_out_proj is None:
        # A resident (D,D) weight block only makes sense while it is small;
        # for very large d_model fall back to an XLA GEMM after the kernel.
        fuse_out_proj = (2 * D * D * itemsize) <= (4 << 20)

    TQ = _pick_seq_tile(S)
    TK = TQ

    # Normalize a provided mask to rank-3 with leading dim 1 or B; keep it in
    # f32 (score dtype) so there is no per-step cast, and never expand a shared
    # mask to a full (B,S,S) array in HBM.
    has_mask = mask is not None
    MB = 0
    if has_mask:
        mask = jnp.asarray(mask, dtype=jnp.float32)
        if mask.ndim == 2:
            mask = mask[None]
        if mask.ndim != 3 or mask.shape[1:] != (S, S) or mask.shape[0] not in (1, B):
            mask = jnp.broadcast_to(mask, (B, S, S))
        MB = mask.shape[0]

    def vmem_estimate(bt: int) -> int:
        # Double-buffered pipeline blocks (q, out, k, v) per packed batch element.
        per_b = 2 * itemsize * (2 * TQ * D + 2 * TK * D)
        # Single-buffered scratch: scaled-q copy + running max/denominator + f32 acc.
        per_b += itemsize * TQ * D + 4 * (TQ * D + 2 * TQ)
        # Live f32 score/probability temporaries (s, p, rescale) in the body.
        per_b += 3 * 4 * TQ * TK
        if has_mask and MB == B:
            per_b += 2 * 4 * TQ * TK
        fixed = 0
        if fuse_out_proj:
            fixed += 2 * itemsize * D * D          # grid-invariant W^T block
        if has_mask and MB == 1:
            fixed += 2 * 4 * TQ * TK               # shared mask block
        return bt * per_b + fixed

    # Working-set target (fits v7x's 64 MiB VMEM with headroom; v5e/v6e have
    # 128 MiB physical and we raise the scoped limit explicitly below).
    budget = 32 << 20
    # Keep >= 2 program points on the parallel grid axes whenever possible so
    # v7x's second TensorCore has work.
    max_bt = B if (S // TQ) >= 2 else max(1, B // 2)
    BT = 1
    for cand in range(max(1, min(B, max_bt, 8)), 0, -1):
        if B % cand == 0 and vmem_estimate(cand) <= budget:
            BT = cand
            break

    vmem_limit = int(min(max(int(1.3 * vmem_estimate(BT)), 32 << 20), 48 << 20))

    grid = (B // BT, S // TQ, S // TK)

    in_specs = [
        pl.BlockSpec((BT, TQ, D), lambda b, qi, ki: (b, qi, 0)),   # q
        pl.BlockSpec((BT, TK, D), lambda b, qi, ki: (b, ki, 0)),   # k
        pl.BlockSpec((BT, TK, D), lambda b, qi, ki: (b, ki, 0)),   # v
    ]
    operands = [q, k, v]
    if has_mask:
        if MB == B:
            in_specs.append(
                pl.BlockSpec((BT, TQ, TK), lambda b, qi, ki: (b, qi, ki)))
        else:  # shared mask: always block 0 along batch
            in_specs.append(
                pl.BlockSpec((1, TQ, TK), lambda b, qi, ki: (0, qi, ki)))
        operands.append(mask)
    if fuse_out_proj:
        in_specs.append(pl.BlockSpec((D, D), lambda b, qi, ki: (0, 0)))  # W^T
        operands.append(w_t)

    pallas_out_dtype = out_dtype if fuse_out_proj else compute_dtype

    grid_spec = pltpu.PrefetchScalarGridSpec(
        num_scalar_prefetch=0,
        grid=grid,
        in_specs=in_specs,
        out_specs=pl.BlockSpec((BT, TQ, D), lambda b, qi, ki: (b, qi, 0)),
        scratch_shapes=[
            pltpu.VMEM((BT, TQ, D), compute_dtype),   # scaled q (resident over ki)
            pltpu.VMEM((BT, TQ, 1), jnp.float32),     # running max
            pltpu.VMEM((BT, TQ, 1), jnp.float32),     # running denominator
            pltpu.VMEM((BT, TQ, D), jnp.float32),     # running numerator
        ],
    )

    out = pl.pallas_call(
        _make_flash_kernel(scale, has_mask, fuse_out_proj),
        out_shape=jax.ShapeDtypeStruct((B, S, D), pallas_out_dtype),
        grid_spec=grid_spec,
        compiler_params=pltpu.CompilerParams(
            dimension_semantics=("parallel", "parallel", "arbitrary"),
            vmem_limit_bytes=vmem_limit),
    )(*operands)

    if not fuse_out_proj:
        # Un-fused fallback for very large d_model: plain XLA GEMM.
        out = jnp.einsum("bqd,ed->bqe", out, w_out).astype(out_dtype)
    return out


def _reference(q, k, v, w_out, head_dim, mask=None):
    scores = jnp.einsum("bqd,bkd->bqk", q.astype(jnp.float32),
                        k.astype(jnp.float32)) / math.sqrt(head_dim)
    if mask is not None:
        scores = scores + jnp.asarray(mask, jnp.float32)
    weights = jax.nn.softmax(scores, axis=-1)
    attn = jnp.einsum("bqk,bkd->bqd", weights, v.astype(jnp.float32))
    out = jnp.einsum("bqd,ed->bqe", attn, jnp.asarray(w_out, jnp.float32))
    return out.astype(q.dtype)


if __name__ == "__main__":
    # Module config: d_model=32, n_heads=4 -> head_dim=8
    d_model, n_heads = 32, 4
    head_dim = d_model // n_heads
    B, S = 2, 8

    key = jax.random.PRNGKey(0)
    kq, kk, kv, kw = jax.random.split(key, 4)
    q = jax.random.normal(kq, (B, S, d_model), dtype=jnp.float32)
    k = jax.random.normal(kk, (B, S, d_model), dtype=jnp.float32)
    v = jax.random.normal(kv, (B, S, d_model), dtype=jnp.float32)
    bound = 1.0 / math.sqrt(d_model)
    w_out = jax.random.uniform(kw, (d_model, d_model), dtype=jnp.float32,
                               minval=-bound, maxval=bound)

    ref = _reference(q, k, v, w_out, head_dim)

    # 1) No mask, exact f32 path (fused out-projection).
    out = jax.block_until_ready(custom_attention(q, k, v, w_out, head_dim))
    assert out.shape == (B, S, d_model)
    assert jnp.allclose(out, ref, atol=2e-3, rtol=2e-3), "no-mask mismatch vs reference"

    # 2) Shared (1,S,S) additive causal mask (never broadcast to (B,S,S)).
    causal = jnp.tril(jnp.ones((S, S), dtype=bool))
    add_mask = jnp.where(causal, 0.0, -1e9).astype(jnp.float32)[None]
    out_m = jax.block_until_ready(custom_attention(q, k, v, w_out, head_dim, add_mask))
    ref_m = _reference(q, k, v, w_out, head_dim, add_mask)
    assert jnp.allclose(out_m, ref_m, atol=2e-3, rtol=2e-3), "masked mismatch vs reference"

    # 3) Per-batch mask + bf16 MXU operands (intentionally lossy -> loose tolerance).
    full_mask = jnp.broadcast_to(add_mask, (B, S, S))
    out_bf = jax.block_until_ready(
        custom_attention(q, k, v, w_out, head_dim, full_mask, allow_bf16_mxu=True))
    assert jnp.allclose(out_bf, ref_m, atol=5e-2, rtol=5e-2), "bf16 path mismatch"

    # 4) Un-fused out-projection fallback path (large-d_model escape hatch).
    out_u = jax.block_until_ready(
        custom_attention(q, k, v, w_out, head_dim, fuse_out_proj=False))
    assert jnp.allclose(out_u, ref, atol=2e-3, rtol=2e-3), "unfused path mismatch"

    print("KERNEL_OK")
</pallas_src>

<mosaic_0001>
module attributes {stable_mosaic.version = 11 : i64} {
  func.func @kernel(%arg0: i32, %arg1: i32, %arg2: i32, %arg3: memref<1x8x32xf32, #tpu.memory_space<vmem>>, %arg4: memref<1x8x32xf32, #tpu.memory_space<vmem>>, %arg5: memref<1x8x32xf32, #tpu.memory_space<vmem>>, %arg6: memref<32x32xf32, #tpu.memory_space<vmem>>, %arg7: memref<1x8x32xf32, #tpu.memory_space<vmem>>, %arg8: memref<1x8x32xf32, #tpu.memory_space<vmem>>, %arg9: memref<1x8x1xf32, #tpu.memory_space<vmem>>, %arg10: memref<1x8x1xf32, #tpu.memory_space<vmem>>, %arg11: memref<1x8x32xf32, #tpu.memory_space<vmem>>) attributes {dimension_semantics = [#tpu.dimension_semantics<parallel>, #tpu.dimension_semantics<parallel>, #tpu.dimension_semantics<arbitrary>], iteration_bounds = array<i64: 2, 1, 1>, scalar_prefetch = 0 : i64, scratch_operands = 4 : i64, tpu.core_type = #tpu.core_type<tc>, window_params = [{transform_indices = @transform_0, window_bounds = array<i64: 1, 8, 32>}, {transform_indices = @transform_1, window_bounds = array<i64: 1, 8, 32>}, {transform_indices = @transform_2, window_bounds = array<i64: 1, 8, 32>}, {pipeline_mode = #tpu.pipeline_mode<synchronous>, transform_indices = @transform_3, window_bounds = array<i64: 32, 32>}, {transform_indices = @transform_4, window_bounds = array<i64: 1, 8, 32>}]} {
    %c0_i32 = arith.constant 0 : i32
    %0 = arith.cmpi eq, %arg2, %c0_i32 : i32
    %1 = arith.extui %0 : i1 to i32
    %c0_i32_0 = arith.constant 0 : i32
    %2 = arith.cmpi ne, %1, %c0_i32_0 : i32
    scf.if %2 {
      %c0_32 = arith.constant 0 : index
      %c0_33 = arith.constant 0 : index
      %c0_34 = arith.constant 0 : index
      %32 = vector.load %arg3[%c0_32, %c0_33, %c0_34] : memref<1x8x32xf32, #tpu.memory_space<vmem>>, vector<1x8x32xf32>
      %cst_35 = arith.constant 0.353553385 : f32
      %33 = vector.broadcast %cst_35 : f32 to vector<1x8x32xf32>
      %34 = arith.mulf %32, %33 : vector<1x8x32xf32>
      %c0_36 = arith.constant 0 : index
      %c0_37 = arith.constant 0 : index
      %c0_38 = arith.constant 0 : index
      %35 = vector.load %arg8[%c0_36, %c0_37, %c0_38] : memref<1x8x32xf32, #tpu.memory_space<vmem>>, vector<1x8x32xf32>
      tpu.vector_store %arg8[%c0_36, %c0_37, %c0_38], %34 {strides = array<i32>} : memref<1x8x32xf32, #tpu.memory_space<vmem>>, vector<1x8x32xf32>,
      %cst_39 = arith.constant 0xFF800000 : f32
      %36 = vector.broadcast %cst_39 : f32 to vector<1x8x1xf32>
      %c0_40 = arith.constant 0 : index
      %c0_41 = arith.constant 0 : index
      %c0_42 = arith.constant 0 : index
      %37 = vector.load %arg9[%c0_40, %c0_41, %c0_42] : memref<1x8x1xf32, #tpu.memory_space<vmem>>, vector<1x8x1xf32>
      tpu.vector_store %arg9[%c0_40, %c0_41, %c0_42], %36 {strides = array<i32>} : memref<1x8x1xf32, #tpu.memory_space<vmem>>, vector<1x8x1xf32>,
      %cst_43 = arith.constant 0.000000e+00 : f32
      %38 = vector.broadcast %cst_43 : f32 to vector<1x8x1xf32>
      %c0_44 = arith.constant 0 : index
      %c0_45 = arith.constant 0 : index
      %c0_46 = arith.constant 0 : index
      %39 = vector.load %arg10[%c0_44, %c0_45, %c0_46] : memref<1x8x1xf32, #tpu.memory_space<vmem>>, vector<1x8x1xf32>
      tpu.vector_store %arg10[%c0_44, %c0_45, %c0_46], %38 {strides = array<i32>} : memref<1x8x1xf32, #tpu.memory_space<vmem>>, vector<1x8x1xf32>,
      %cst_47 = arith.constant 0.000000e+00 : f32
      %40 = vector.broadcast %cst_47 : f32 to vector<1x8x32xf32>
      %c0_48 = arith.constant 0 : index
      %c0_49 = arith.constant 0 : index
      %c0_50 = arith.constant 0 : index
      %41 = vector.load %arg11[%c0_48, %c0_49, %c0_50] : memref<1x8x32xf32, #tpu.memory_space<vmem>>, vector<1x8x32xf32>
      tpu.vector_store %arg11[%c0_48, %c0_49, %c0_50], %40 {strides = array<i32>} : memref<1x8x32xf32, #tpu.memory_space<vmem>>, vector<1x8x32xf32>,
    } else {
    }
    %c0 = arith.constant 0 : index
    %c0_1 = arith.constant 0 : index
    %c0_2 = arith.constant 0 : index
    %3 = vector.load %arg8[%c0, %c0_1, %c0_2] : memref<1x8x32xf32, #tpu.memory_space<vmem>>, vector<1x8x32xf32>
    %c0_3 = arith.constant 0 : index
    %c0_4 = arith.constant 0 : index
    %c0_5 = arith.constant 0 : index
    %4 = vector.load %arg4[%c0_3, %c0_4, %c0_5] : memref<1x8x32xf32, #tpu.memory_space<vmem>>, vector<1x8x32xf32>
    "tpu.trace_start"() <{level = 10 : i32, message = "bqd,bkd->bqk"}> : () -> ()
    %cst = arith.constant dense<0.000000e+00> : vector<1x8x8xf32>
    %5 = tpu.matmul %3, %4, %cst {dimension_numbers = #tpu.dot_dimension_numbers<[2], [2], [1], [1], [0, 0, 0, 1, 1, 1], [0], [0]>} : vector<1x8x32xf32>, vector<1x8x32xf32>, vector<1x8x8xf32> -> vector<1x8x8xf32>
    "tpu.trace_stop"() : () -> ()
    %c0_6 = arith.constant 0 : index
    %c0_7 = arith.constant 0 : index
    %c0_8 = arith.constant 0 : index
    %6 = vector.load %arg9[%c0_6, %c0_7, %c0_8] : memref<1x8x1xf32, #tpu.memory_space<vmem>>, vector<1x8x1xf32>
    %cst_9 = arith.constant dense<0xFF800000> : vector<1x8xf32>
    %7 = vector.multi_reduction <maximumf>, %5, %cst_9 [2] : vector<1x8x8xf32> to vector<1x8xf32>
    %8 = vector.shape_cast %7 : vector<1x8xf32> to vector<1x8x1xf32>
    %9 = arith.maximumf %6, %8 : vector<1x8x1xf32>
    %10 = arith.subf %6, %9 : vector<1x8x1xf32>
    %11 = math.exp %10 : vector<1x8x1xf32>
    %12 = vector.broadcast %9 : vector<1x8x1xf32> to vector<1x8x8xf32>
    %13 = arith.subf %5, %12 : vector<1x8x8xf32>
    %14 = math.exp %13 : vector<1x8x8xf32>
    %c0_10 = arith.constant 0 : index
    %c0_11 = arith.constant 0 : index
    %c0_12 = arith.constant 0 : index
    %15 = vector.load %arg10[%c0_10, %c0_11, %c0_12] : memref<1x8x1xf32, #tpu.memory_space<vmem>>, vector<1x8x1xf32>
    %16 = arith.mulf %11, %15 : vector<1x8x1xf32>
    %cst_13 = arith.constant dense<0.000000e+00> : vector<1x8xf32>
    %17 = vector.multi_reduction <add>, %14, %cst_13 [2] : vector<1x8x8xf32> to vector<1x8xf32>
    %18 = vector.shape_cast %17 : vector<1x8xf32> to vector<1x8x1xf32>
    %19 = arith.addf %16, %18 : vector<1x8x1xf32>
    %c0_14 = arith.constant 0 : index
    %c0_15 = arith.constant 0 : index
    %c0_16 = arith.constant 0 : index
    %20 = vector.load %arg10[%c0_14, %c0_15, %c0_16] : memref<1x8x1xf32, #tpu.memory_space<vmem>>, vector<1x8x1xf32>
    tpu.vector_store %arg10[%c0_14, %c0_15, %c0_16], %19 {strides = array<i32>} : memref<1x8x1xf32, #tpu.memory_space<vmem>>, vector<1x8x1xf32>,
    %c0_17 = arith.constant 0 : index
    %c0_18 = arith.constant 0 : index
    %c0_19 = arith.constant 0 : index
    %21 = vector.load %arg11[%c0_17, %c0_18, %c0_19] : memref<1x8x32xf32, #tpu.memory_space<vmem>>, vector<1x8x32xf32>
    %22 = vector.broadcast %11 : vector<1x8x1xf32> to vector<1x8x32xf32>
    %23 = arith.mulf %22, %21 : vector<1x8x32xf32>
    %c0_20 = arith.constant 0 : index
    %c0_21 = arith.constant 0 : index
    %c0_22 = arith.constant 0 : index
    %24 = vector.load %arg5[%c0_20, %c0_21, %c0_22] : memref<1x8x32xf32, #tpu.memory_space<vmem>>, vector<1x8x32xf32>
    "tpu.trace_start"() <{level = 10 : i32, message = "bqk,bkd->bqd"}> : () -> ()
    %cst_23 = arith.constant dense<0.000000e+00> : vector<1x8x32xf32>
    %25 = tpu.matmul %14, %24, %cst_23 {dimension_numbers = #tpu.dot_dimension_numbers<[2], [1], [1], [2], [0, 0, 0, 1, 1, 2], [0], [0]>} : vector<1x8x8xf32>, vector<1x8x32xf32>, vector<1x8x32xf32> -> vector<1x8x32xf32>
    "tpu.trace_stop"() : () -> ()
    %26 = arith.addf %23, %25 : vector<1x8x32xf32>
    %c0_24 = arith.constant 0 : index
    %c0_25 = arith.constant 0 : index
    %c0_26 = arith.constant 0 : index
    %27 = vector.load %arg11[%c0_24, %c0_25, %c0_26] : memref<1x8x32xf32, #tpu.memory_space<vmem>>, vector<1x8x32xf32>
    tpu.vector_store %arg11[%c0_24, %c0_25, %c0_26], %26 {strides = array<i32>} : memref<1x8x32xf32, #tpu.memory_space<vmem>>, vector<1x8x32xf32>,
    %c0_27 = arith.constant 0 : index
    %c0_28 = arith.constant 0 : index
    %c0_29 = arith.constant 0 : index
    %28 = vector.load %arg9[%c0_27, %c0_28, %c0_29] : memref<1x8x1xf32, #tpu.memory_space<vmem>>, vector<1x8x1xf32>
    tpu.vector_store %arg9[%c0_27, %c0_28, %c0_29], %9 {strides = array<i32>} : memref<1x8x1xf32, #tpu.memory_space<vmem>>, vector<1x8x1xf32>,
    %c0_i32_30 = arith.constant 0 : i32
    %29 = arith.cmpi eq, %arg2, %c0_i32_30 : i32
    %30 = arith.extui %29 : i1 to i32
    %c0_i32_31 = arith.constant 0 : i32
    %31 = arith.cmpi ne, %30, %c0_i32_31 : i32
    scf.if %31 {
      %c0_32 = arith.constant 0 : index
      %c0_33 = arith.constant 0 : index
      %c0_34 = arith.constant 0 : index
      %32 = vector.load %arg11[%c0_32, %c0_33, %c0_34] : memref<1x8x32xf32, #tpu.memory_space<vmem>>, vector<1x8x32xf32>
      %c0_35 = arith.constant 0 : index
      %c0_36 = arith.constant 0 : index
      %c0_37 = arith.constant 0 : index
      %33 = vector.load %arg10[%c0_35, %c0_36, %c0_37] : memref<1x8x1xf32, #tpu.memory_space<vmem>>, vector<1x8x1xf32>
      %34 = vector.broadcast %33 : vector<1x8x1xf32> to vector<1x8x32xf32>
      %35 = arith.divf %32, %34 : vector<1x8x32xf32>
      %c0_38 = arith.constant 0 : index
      %c0_39 = arith.constant 0 : index
      %36 = vector.load %arg6[%c0_38, %c0_39] : memref<32x32xf32, #tpu.memory_space<vmem>>, vector<32x32xf32>
      %cst_40 = arith.constant dense<0.000000e+00> : vector<1x8x32xf32>
      %37 = tpu.matmul %35, %36, %cst_40 {dimension_numbers = #tpu.dot_dimension_numbers<[2], [0], [0, 1], [1], [0, 0, 0, 1, 1, 1], [], []>} : vector<1x8x32xf32>, vector<32x32xf32>, vector<1x8x32xf32> -> vector<1x8x32xf32>
      %c0_41 = arith.constant 0 : index
      %c0_42 = arith.constant 0 : index
      %c0_43 = arith.constant 0 : index
      %38 = vector.load %arg7[%c0_41, %c0_42, %c0_43] : memref<1x8x32xf32, #tpu.memory_space<vmem>>, vector<1x8x32xf32>
      tpu.vector_store %arg7[%c0_41, %c0_42, %c0_43], %37 {strides = array<i32>} : memref<1x8x32xf32, #tpu.memory_space<vmem>>, vector<1x8x32xf32>,
    } else {
    }
    return
  }
  func.func @transform_0(%arg0: i32, %arg1: i32, %arg2: i32) -> (i32, i32, i32) {
    %c0_i32 = arith.constant 0 : i32
    %c0_i32_0 = arith.constant 0 : i32
    return %arg0, %arg1, %c0_i32 : i32, i32, i32
  }
  func.func @transform_1(%arg0: i32, %arg1: i32, %arg2: i32) -> (i32, i32, i32) {
    %c0_i32 = arith.constant 0 : i32
    %c0_i32_0 = arith.constant 0 : i32
    return %arg0, %arg2, %c0_i32 : i32, i32, i32
  }
  func.func @transform_2(%arg0: i32, %arg1: i32, %arg2: i32) -> (i32, i32, i32) {
    %c0_i32 = arith.constant 0 : i32
    %c0_i32_0 = arith.constant 0 : i32
    return %arg0, %arg2, %c0_i32 : i32, i32, i32
  }
  func.func @transform_3(%arg0: i32, %arg1: i32, %arg2: i32) -> (i32, i32) {
    %c0_i32 = arith.constant 0 : i32
    %c0_i32_0 = arith.constant 0 : i32
    %c0_i32_1 = arith.constant 0 : i32
    return %c0_i32, %c0_i32_0 : i32, i32
  }
  func.func @transform_4(%arg0: i32, %arg1: i32, %arg2: i32) -> (i32, i32, i32) {
    %c0_i32 = arith.constant 0 : i32
    %c0_i32_0 = arith.constant 0 : i32
    return %arg0, %arg1, %c0_i32 : i32, i32, i32
  }
}

</mosaic_0001>

<bundles_post_ra>
// kernel: tpu_custom_call.1
= control target key start
LH: loop header
LB: loop body
LE: loop exit
PB: predicated region body
PF: predicated region fallthrough
CT: control target
= control target key end

     0   :  { %s1491_s0 = inlined_call_operand.hbm [shape: f32[2,8,32], index: 0, kind: input, shape index: {}]   ;;  %s1492_s1 = inlined_call_operand.hbm [shape: f32[2,8,32], index: 1, kind: input, shape index: {}]   ;;  %s1493_s2 = inlined_call_operand.hbm [shape: f32[2,8,32], index: 2, kind: input, shape index: {}]   ;;  %s1494_s3 = inlined_call_operand.hbm [shape: f32[32,32], index: 3, kind: input, shape index: {}]   ;;  %s1495_s4 = inlined_call_operand.hbm [shape: f32[2,8,32], index: 4, kind: output, shape index: {}]  }
   0x1   :  { %1513 = sst [smem:[#allocation25_spill]] %s1492_s1 }
   0x2   :  { %1514 = sst [smem:[#allocation26_spill]] %s1495_s4 }
   0x3   :  { %9 = vsyncpa [#allocation7], 0 }
   0x4   :  { %11 = vsyncpa [#allocation7 + $0x1], 0 }
   0x5   :  { %12 = vsyncpa [#allocation10], 0 }
   0x6   :  { %14 = vsyncpa [#allocation10 + $0x1], 0 }
   0x7   :  { %15 = vsyncpa [#allocation13], 0 }
   0x8   :  { %16 = vsyncpa [#allocation8], 0 }
   0x9   :  { %18 = vsyncpa [#allocation8 + $0x1], 0  ;;  %s1178_s15 = smov 0   ;;  %s1180_s16 = smov 0  }
   0xa   :  { %s1182_s17 = smov 0   ;;  %s1184_s18 = smov 0  }
   0xb   :  { %s1186_s19 = smov 0   ;;  %s1188_s20 = smov 0  }
   0xc LB: > { %1515 = sst [smem:[#allocation19_spill]] %s1119_s15  ;;  %s43_s21 = sadd.s32 1, %s1135_s19  ;;  %s1139_s20 = sphi %s1188_s20, %s24_s20   ;;  %s1135_s19 = sphi %s1186_s19, %s1547_s19   ;;  %s1131_s18 = sphi %s1184_s18, %s1546_s18   ;;  %s1127_s17 = sphi %s1182_s17, %s1550_s17   ;;  %s1123_s16 = sphi %s1180_s16, %s1549_s16   ;;  %s1119_s15 = sphi %s1178_s15, %s1548_s15  }
   0xd   : > { %1516 = sst [smem:[#allocation20_spill]] %s1135_s19  ;;  %s52_s22 = sadd.s32 1, %s1127_s17 }
   0xe   : > { %1517 = sst [smem:[#allocation21_spill]] %s1139_s20  ;;  %p45_p0 = scmp.ge.s32.totalorder %s43_s21, 2 }
   0xf   : > { %p1496_p1 = scmp.ne.s32.totalorder %s1127_s17, %s1123_s16  ;;  %p60_p2 = scmp.eq.s32.totalorder %s1139_s20, 0 }
  0x10   : > { %s1552_s21 = smov (%p45_p0, %s43_s21), 0  ;;  %p864_p5 = scmp.lt.s32.totalorder %s1139_s20, 2 }
  0x11   : > { %1518 = sst [smem:[#allocation22_spill]] %s1552_s21  ;;  %p61_p4 = por %p60_p2, %p1496_p1 }
  0x12   : > { %s47_s23 = ssub.s32 %s1135_s19, %s1552_s21  ;;  %s1497_s24 = sand.u32 1, %s1127_s17  }
  0x13   : > { %p50_p6 = scmp.eq.s32.totalorder %s47_s23, 0  ;;  %s1225_s25 = sshll.u32 %s1497_s24, 3 }
  0x14   : > { %s1228_s26 = sshll.u32 %s1135_s19, 7  ;;  %p1230_p7 = pnand %p864_p5, %p61_p4 }
  0x15   : > { %s1235_s28 = scalar_select %p50_p6, %s1127_s17, %s52_s22  }
  0x16   : > { %s1519_s27 = scalar_select %p1230_p7, 1, 0 }
  0x17   : > { %1520 = sst [smem:[#allocation23_spill]] %s1235_s28  ;;  %s226_s29 = sand.u32 1, %s1139_s20  }
  0x18   : > { %s1521_s1 = sld [smem:[#allocation25_spill]]  ;;  %s230_s7 = scalar_lea.vmem [#allocation9], %s1225_s25 }
  0x19   : > { %s238_s8 = sshll.u32 %s230_s7, 4  ;;  %s1247_s9 = scalar_lea.sflag [#allocation10], %s226_s29  ;;  %s1245_s8 = int_to_ptr.vmem [resolvable:$true] %s238_s8 }
  0x1a   : > { %p1253_p9 = pneg %p1230_p7 }
  0x1c   : > { %s1522_s11 = scalar_select %p1253_p9, 1, 0 }
  0x1e   : > { %s1242_s6 = scalar_lea.hbm %s1521_s1, %s1228_s26  ;;  %s936_s14 = scalar_lea.hbm %s1521_s1, 256 }
  0x1f   : > { %s931_s10 = scalar_lea.hbm %s1242_s6, 128  ;;  %p937_p12 = scmp.lt.u32.totalorder %s1242_s6, %s1521_s1 }
  0x20   : > { %p932_p8 = scmp.ne.s32.totalorder %s1242_s6, %s931_s10  ;;  %p938_p13 = scmp.lt.u32.totalorder %s936_s14, %s931_s10 }
  0x21   : > { %p940_p2 = scmp.lt.u32.totalorder %s931_s10, %s1242_s6 }
  0x22   : > { %p934_p10 = pnand %p1253_p9, %p932_p8  ;;  %p939_p0 = por %p938_p13, %p937_p12 }
  0x24   : > { %p935_p11 = pneg %p934_p10  ;;  %p941_p4 = por %p940_p2, %p939_p0 }
  0x26   : > { %p942_p5 = pnand %p941_p4, %p935_p11 }
  0x28   : > { %945 = shalt.err (!%p942_p5)
}
  0x29   : > { %s946_s29 = scalar_lea.vmem %s1245_s8, 128  ;;  %s1141_s30 = smov [#allocation9]  }
  0x2a   : > { %p947_p6 = scmp.ne.s32.totalorder %s1245_s8, %s946_s29  ;;  %s951_s5 = sshll.u32 %s1141_s30, 4  ;;  %s952_s5 = int_to_ptr.vmem [resolvable:$false] %s951_s5 }
  0x2b   : > { %s953_s7 = scalar_lea.vmem %s952_s5, 256  ;;  %p954_p3 = scmp.lt.s32.totalorder %s1245_s8, %s952_s5 }
  0x2c   : > { %p949_p8 = pnand %p947_p6, %p1253_p9  ;;  %p955_p1 = scmp.lt.s32.totalorder %s953_s7, %s946_s29 }
  0x2e   : > { %p950_p10 = pneg %p949_p8  ;;  %p956_p12 = por %p955_p1, %p954_p3 }
  0x30   : > { %p957_p13 = pnand %p956_p12, %p950_p10 }
  0x32   : > { %960 = shalt.err (!%p957_p13)
}
  0x33   : > { %855 = dma.hbm_to_vmem [thread:$0]  (!%p1230_p7), %s1242_s6, 128, %s1245_s8, %s1247_s9  }
  0x34   : > { %s1278_s10 = sadd.s32 4294967295, %s1139_s20   ;;  %s773_s12 = sadd.s32 4294967294, %s1139_s20  }
  0x35   : > { %p65_p1 = scmp.ne.s32.totalorder %s1123_s16, %s1119_s15  ;;  %p1500_p3 = scmp.eq.s32.totalorder %s1278_s10, 0 }
  0x36   : > { %p168_p11 = scmp.eq.s32.totalorder %s1278_s10, 1  ;;  %p174_p0 = scmp.eq.s32.totalorder %s773_s12, 1 }
  0x37   : > { %p774_p2 = scmp.ge.s32.totalorder %s1139_s20, 1  ;;  %p1288_p4 = por %p1500_p3, %p65_p1 }
  0x38   : > { %p1524_p5 = scmp.ne.s32.totalorder %s1127_s17, %s1123_s16  ;;  %p1299_p8 = por %p174_p0, %p65_p1 }
  0x39   : > { %s1523_s13 = scalar_select %p1288_p4, 1, 0 }
  0x3a   : > { %p1295_p6 = por %p168_p11, %p1524_p5  ;;  %p181_p10 = scmp.lt.s32.totalorder %s1139_s20, 3 }
  0x3b   : > { %s1526_s8 = scalar_select %p1299_p8, 1, 0 }
  0x3c   : > { %s1525_s6 = scalar_select %p1295_p6, 1, 0 }
  0x3d   : > { %1527 = sst [smem:[#allocation24_spill]] %s1526_s8  ;;  %p1304_p12 = pnand %p774_p2, %p181_p10 }
  0x3e   : > { %s1142_s22 = smov [#allocation12]   ;;  %s1322_s7 = scalar_lea.hbm %s1491_s0, %s1228_s26 }
  0x3f   : > { %s1528_s14 = scalar_select %p1304_p12, 1, 0 }
  0x40   : > { %s193_s23 = sshll.u32 %s1142_s22, 4  ;;  %p845_p13 = pneg %p1304_p12  ;;  %s1308_s23 = int_to_ptr.vmem [resolvable:$true] %s193_s23 }
  0x41   : > { %s211_s12 = scalar_lea.vmem [#allocation6], %s1225_s25  ;;  %s961_s21 = scalar_lea.hbm %s1494_s3, 512 }
  0x42   : > { %p1314_p11 = pnand %p845_p13, %p1500_p3  ;;  %s219_s24 = sshll.u32 %s211_s12, 4  ;;  %s1325_s24 = int_to_ptr.vmem [resolvable:$true] %s219_s24 }
  0x43   : > { %p962_p1 = scmp.ne.s32.totalorder %s1494_s3, %s961_s21  ;;  %p968_p10 = scmp.lt.u32.totalorder %s961_s21, %s1494_s3 }
  0x44   : > { %p963_p0 = pneg %p1314_p11 }
  0x46   : > { %p964_p2 = pnand %p963_p0, %p962_p1 }
  0x48   : > { %p965_p5 = pneg %p964_p2 }
  0x4a   : > { %p970_p13 = pnand %p968_p10, %p965_p5 }
  0x4c   : > { %973 = shalt.err (!%p970_p13)
}
  0x4d   : > { %s974_s12 = scalar_lea.vmem %s1308_s23, 512  ;;  %p982_p4 = scmp.lt.s32.totalorder %s1308_s23, %s1308_s23 }
  0x4e   : > { %p975_p3 = scmp.ne.s32.totalorder %s1308_s23, %s974_s12  ;;  %p983_p12 = scmp.lt.s32.totalorder %s974_s12, %s974_s12 }
  0x50   : > { %p977_p8 = pnand %p975_p3, %p963_p0  ;;  %p984_p7 = por %p983_p12, %p982_p4 }
  0x52   : > { %p978_p6 = pneg %p977_p8 }
  0x54   : > { %p985_p9 = pnand %p984_p7, %p978_p6 }
  0x56   : > { %988 = shalt.err (!%p985_p9)
}
  0x57   : > { %s1143_s1 = smov 128   ;;  %s1144_s19 = smov 8  }
  0x58   : > { %848 = dma.hbm_to_vmem [thread:$0]  (!%p1314_p11), %s1494_s3, 512, %s1308_s23, [#allocation13], %s1143_s1, %s1143_s1, %s1144_s19  }
  0x59   : > { %s1530_s22 = sand.u32 1, %s1127_s17   ;;  %s989_s5 = scalar_lea.hbm %s1322_s7, 128 }
  0x5a   : > { %s208_s30 = scalar_lea.sflag [#allocation7], %s1530_s22  ;;  %p990_p7 = scmp.ne.s32.totalorder %s1322_s7, %s989_s5 }
  0x5b   : > { %p1531_p9 = scmp.ne.s32.totalorder %s1522_s11, 0  ;;  %s994_s8 = scalar_lea.hbm %s1491_s0, 256 }
  0x5c   : > { %p995_p6 = scmp.lt.u32.totalorder %s1322_s7, %s1491_s0  ;;  %p996_p8 = scmp.lt.u32.totalorder %s994_s8, %s989_s5 }
  0x5d   : > { %p992_p3 = pnand %p990_p7, %p1531_p9  ;;  %p998_p1 = scmp.lt.u32.totalorder %s989_s5, %s1322_s7 }
  0x5e   : > { %p997_p12 = por %p996_p8, %p995_p6 }
  0x5f   : > { %p993_p4 = pneg %p992_p3 }
  0x60   : > { %p999_p0 = por %p998_p1, %p997_p12 }
  0x62   : > { %p1000_p11 = pnand %p999_p0, %p993_p4 }
  0x64   : > { %1003 = shalt.err (!%p1000_p11)
}
  0x65   : > { %s1004_s23 = scalar_lea.vmem %s1325_s24, 128  ;;  %s1145_s20 = smov [#allocation6]  }
  0x66   : > { %p1005_p2 = scmp.ne.s32.totalorder %s1325_s24, %s1004_s23  ;;  %s1009_s29 = sshll.u32 %s1145_s20, 4  ;;  %s1010_s29 = int_to_ptr.vmem [resolvable:$false] %s1009_s29 }
  0x67   : > { %s1011_s4 = scalar_lea.vmem %s1010_s29, 256  ;;  %p1012_p13 = scmp.lt.s32.totalorder %s1325_s24, %s1010_s29 }
  0x68   : > { %p1007_p5 = pnand %p1005_p2, %p1531_p9  ;;  %p1013_p7 = scmp.lt.s32.totalorder %s1011_s4, %s1004_s23 }
  0x6a   : > { %p1008_p10 = pneg %p1007_p5  ;;  %p1014_p3 = por %p1013_p7, %p1012_p13 }
  0x6c   : > { %p1015_p6 = pnand %p1014_p3, %p1008_p10 }
  0x6e   : > { %1018 = shalt.err (!%p1015_p6)
}
  0x6f   : > { %p1532_p4 = scmp.ne.s32.totalorder %s1519_s27, 0  ;;  %s1375_s1 = scalar_lea.hbm %s1493_s2, %s1228_s26 }
  0x70   : > { %s249_s19 = scalar_lea.vmem [#allocation11], %s1225_s25  ;;  %s1019_s28 = scalar_lea.hbm %s1375_s1, 128 }
  0x71   : > { %852 = dma.hbm_to_vmem [thread:$0]  (!%p1532_p4), %s1322_s7, 128, %s1325_s24, %s208_s30  }
  0x72   : > { %s257_s21 = sshll.u32 %s249_s19, 4  ;;  %p1020_p8 = scmp.ne.s32.totalorder %s1375_s1, %s1019_s28  ;;  %s258_s21 = int_to_ptr.vmem [resolvable:$true] %s257_s21 }
  0x73   : > { %s1024_s24 = scalar_lea.hbm %s1493_s2, 256  ;;  %p1025_p0 = scmp.lt.u32.totalorder %s1375_s1, %s1493_s2 }
  0x74   : > { %p1022_p12 = pnand %p1020_p8, %p1531_p9  ;;  %p1026_p11 = scmp.lt.u32.totalorder %s1024_s24, %s1019_s28 }
  0x75   : > { %p1028_p5 = scmp.lt.u32.totalorder %s1019_s28, %s1375_s1 }
  0x76   : > { %p1023_p1 = pneg %p1022_p12  ;;  %p1027_p2 = por %p1026_p11, %p1025_p0 }
  0x78   : > { %p1029_p10 = por %p1028_p5, %p1027_p2 }
  0x7a   : > { %p1030_p13 = pnand %p1029_p10, %p1023_p1 }
  0x7c   : > { %1033 = shalt.err (!%p1030_p13)
}
  0x7d   : > { %s1034_s25 = scalar_lea.vmem %s258_s21, 128  ;;  %s1146_s26 = smov [#allocation11]  }
  0x7e   : > { %p1035_p7 = scmp.ne.s32.totalorder %s258_s21, %s1034_s25  ;;  %s1039_s12 = sshll.u32 %s1146_s26, 4  ;;  %s1040_s12 = int_to_ptr.vmem [resolvable:$false] %s1039_s12 }
  0x7f   : > { %s1041_s23 = scalar_lea.vmem %s1040_s12, 256  ;;  %p1042_p8 = scmp.lt.s32.totalorder %s258_s21, %s1040_s12 }
  0x80   : > { %p1037_p3 = pnand %p1035_p7, %p1531_p9  ;;  %p1043_p12 = scmp.lt.s32.totalorder %s1041_s23, %s1034_s25 }
  0x82   : > { %p1038_p6 = pneg %p1037_p3  ;;  %p1044_p4 = por %p1043_p12, %p1042_p8 }
  0x84   : > { %p1045_p0 = pnand %p1044_p4, %p1038_p6 }
  0x86   : > { %1048 = shalt.err (!%p1045_p0)
}
  0x87   : > { %p1533_p11 = scmp.ne.s32.totalorder %s1519_s27, 0  ;;  %p1534_p1 = scmp.ne.s32.totalorder %s1528_s14, 0 }
  0x88   : > { %s1399_s11 = sand.u32 (!%p1534_p1), 1, %s1123_s16   ;;  %p1535_p9 = scmp.ne.s32.totalorder (!%p1534_p1), %s1523_s13, 0 }
  0x89   : > { %858 = dma.hbm_to_vmem [thread:$0]  (!%p1533_p11), %s1375_s1, 128, %s258_s21, %s1247_s9  }
  0x8a   : > { %266 = sbr.rel (%p1534_p1) target bundleno = 1183 (0x49f), region = 36  ;;  %s1402_s20 = sshll.u32 (!%p1534_p1), %s1399_s11, 3 }
  0x8b   : > { %s269_s29 = scalar_lea.sflag (!%p1534_p1), [#allocation7], %s1399_s11  ;;  %s272_s4 = scalar_lea.vmem (!%p1534_p1), [#allocation6], %s1402_s20 }
  0x91   : > { %1102 = dma.done.wait (%p1535_p9), %s269_s29, 128  }
  0x92   : > { %1104 = vsyncadd (%p1535_p9), %s269_s29, 4294967168  ;;  %s277_s27 = sand.u32 1, %s1278_s10   ;;  %s281_s14 = scalar_lea.vmem [#allocation9], %s1402_s20 }
  0x93   : > { %s278_s9 = scalar_lea.sflag [#allocation10], %s277_s27 }
  0x94   : > { %1106 = dma.done.wait (%p1535_p9), %s278_s9, 256  }
  0x95   : > { %1108 = vsyncadd (%p1535_p9), %s278_s9, 4294967040  ;;  %s290_s15 = scalar_lea.vmem [#allocation11], %s1402_s20  ;;  %p1536_p4 = scmp.eq.s32.totalorder %s1278_s10, 0 }
  0x97   : > { %1110 = dma.done.wait (%p1536_p4), [#allocation13], 512   ;;  %p1537_p2 = pmov %p1536_p4 }
  0x98   : > { %vm335_vm0 = vcmask 261120   ;;  %v1147_v0 = vmov 0.0   ;;  %vm1148_vm1 = vmmov 0   ;;  %v333_v1 = vld [vmem:[%s272_s4] sm:$0xff]  ;;  %v342_v2 = vld [vmem:[%s281_s14] sm:$0xff]  ;;  %vm337_vm2 = vcmask 7168  }
  0x99   : > { %1112 = vsyncadd (%p1537_p2), [#allocation13], 4294966784  ;;  %806 = vmatprep.subr.mxu0 %v1147_v0  ;;  %340 = vst.msk [vmem:[#allocation5] sm:$0xff] %vm335_vm0, %v1147_v0  ;;  %808 = vmatprep.mubr.msk.f32.mxu0 %vm1148_vm1, %v1147_v0  ;;  %v334_v3 = vmul.f32 0.35355338, %v333_v1  ;;  %v1149_v5 = vmov -inf  }
  0x9a   : > { %824 = vmatprep.mubr.msk.f32.mxu1 %vm1148_vm1, %v1147_v0  ;;  %807 = vmatpush3.xpose.msk.msra.mxu0 %vm335_vm0, %v342_v2  ;;  %338 = vst.msk [vmem:[#allocation3] sm:$0xff] %vm337_vm2, %v1149_v5  ;;  %339 = vst.msk [vmem:[#allocation4] sm:$0xff] %vm337_vm2, %v1147_v0  ;;  %vm421_vm3 = vcmask 64512   ;;  %v1150_v9 = vmov 0   ;;  %v452_v14 = vld [vmem:[%s290_s15] sm:$0xff]  ;;  %v541_v27 = vld [vmem:[#allocation12] sm:$0xff] }
  0x9b   : > { %811 = vmatprep.subr.mxu0 %v1147_v0  ;;  %336 = vst.msk [vmem:[#allocation2] sm:$0xff] %vm335_vm0, %v334_v3  ;;  %923 = vset.pattern.permute.xlu0 %v1150_v9  ;;  %v542_v28 = vld [vmem:[#allocation12 + $0x8] sm:$0xff]  ;;  %v543_v29 = vld [vmem:[#allocation12 + $0x10] sm:$0xff]  ;;  %v1151_v30 = vmov 0.0|0.0   ;;  %v544_v32 = vld [vmem:[#allocation12 + $0x18] sm:$0xff]  ;;  %s794_s10 = sshll.u32 %s1131_s18, 7 }
  0x9c   : > { %924 = vset.pattern.permute.xlu1 %v1150_v9  ;;  %827 = vmatprep.subr.bf16.mxu1 %v1151_v30  ;;  %v828_v31 = vpack.c.bf16 %v542_v28, %v541_v27  ;;  %v831_v33 = vpack.c.bf16 %v544_v32, %v543_v29  ;;  %s328_s13 = scalar_lea.vmem [#allocation14], %s1402_s20  ;;  %s1538_s21 = sld [smem:[#allocation26_spill]] }
  0x9d   : > { %s634_s8 = sshll.u32 %s328_s13, 4  ;;  %s620_s22 = scalar_lea.sflag [#allocation8], %s1399_s11  ;;  %s1443_s8 = int_to_ptr.vmem [resolvable:$true] %s634_s8 }
  0x9e   : > { %829 = vmatpush3.bf16.msra.mxu1 %v828_v31  ;;  %s1049_s5 = scalar_lea.vmem %s1443_s8, 128  ;;  %p1539_p10 = scmp.ne.s32.totalorder %s1525_s6, 0 }
  0x9f   : > { %830 = vmatprep.subr.bf16.mxu1 %v1151_v30  ;;  %p1050_p5 = scmp.ne.s32.totalorder %s1443_s8, %s1049_s5  ;;  %s1152_s18 = smov [#allocation14]  }
  0xa0   : > { %v445_v34 = vld [vmem:[#allocation5] sm:$0xff]  ;;  %s1053_s24 = sshll.u32 %s1152_s18, 4  ;;  %s1054_s24 = int_to_ptr.vmem [resolvable:$false] %s1053_s24 }
  0xa1   : > { %v420_v10 = vld [vmem:[#allocation3] sm:$0xff]  ;;  %v437_v22 = vld [vmem:[#allocation4] sm:$0xff]  ;;  %p1051_p13 = pnand %p1050_p5, %p1539_p10  ;;  %s1055_s7 = scalar_lea.vmem %s1054_s24, 256 }
  0xa2   : > { %v341_v4 = vld [vmem:[#allocation2] sm:$0xff]  ;;  %832 = vmatpush3.bf16.msra.mxu1 %v831_v33  ;;  %s1441_s28 = scalar_lea.hbm %s1538_s21, %s794_s10  ;;  %p1056_p3 = scmp.lt.s32.totalorder %s1443_s8, %s1054_s24 }
  0xa3   : > { %809 = vmatmul.mubr.msk.f32.vlgmr.msra.gmra.mrb[0].mxu0 %vm335_vm0, %v341_v4  ;;  %p1052_p7 = pneg %p1051_p13  ;;  %p1057_p6 = scmp.lt.s32.totalorder %s1055_s7, %s1049_s5 }
  0xa4   : > { %813 = vmatprep.mubr.msk.f32.mxu0 %vm1148_vm1, %v1147_v0  ;;  %812 = vmatpush3.msra.mxu0 %v452_v14 }
  0xa5   : > { %p1058_p8 = por %p1057_p6, %p1056_p3 }
  0xa7   : > { %p1059_p12 = pnand %p1058_p8, %p1052_p7 }
 0x176   : > { %v416_v6 = vpop.f32.mrb[0].mxu0 }
 0x177   : > { %v810_v7 = vpop.f32.mrb[1].mxu0  ;;  %v422_v8 = vsel %vm421_vm3, %v416_v6, -inf }
 0x178   : > { %423 = vmax.xlane.f32.xlu0 %v422_v8 }
 0x205   : > { %v424_v11 = vpop.xlane.xlu0 %423 }
 0x206   : > { %v425_v12 = vmax.f32 %v420_v10, %v424_v11 }
 0x208   : > { %v426_v13 = vsub.f32 %v420_v10, %v425_v12  ;;  %528 = vst.msk [vmem:[#allocation3] sm:$0xff] %vm337_vm2, %v425_v12  ;;  %431 = vperm.xlu0 %923, %v425_v12  }
 0x20a   : > { %v427_v20 = vmul.f32 1.442695, %v426_v13 }
 0x287   : > { %v432_v15 = vpop.permute.xlu0 %431 }
 0x288   : > { %v434_v16 = vsub.f32 %v416_v6, %v432_v15 }
 0x28a   : > { %v435_v17 = vmul.f32 1.442695, %v434_v16 }
 0x28c   : > { %925 = vpow2.f32 %v435_v17 }
 0x28d   : > { %927 = vpow2.f32 %v427_v20 }
 0x296   : > { %v926_v18 = vpop.eup %925 }
 0x297   : > { %814 = vmatmul.mubr.msk.f32.vlgmr.msra.gmra.mrb[2].mxu0 %vm421_vm3, %v926_v18  ;;  %v439_v19 = vsel %vm421_vm3, %v926_v18, 0.0  ;;  %v928_v21 = vpop.eup %927 }
 0x298   : > { %440 = vadd.xlane.f32.xlu1 %v439_v19  ;;  %v438_v23 = vmul.f32 %v928_v21, %v437_v22 }
 0x2a9   : > { %448 = vperm.xlu1 %924, %v928_v21  }
 0x325   : > { %v441_v24 = vpop.xlane.xlu1 %440 }
 0x326   : > { %v442_v25 = vadd.f32 %v441_v24, %v438_v23 }
 0x328   : > { %444 = vst.msk [vmem:[#allocation4] sm:$0xff] %vm337_vm2, %v442_v25 }
 0x329   : > { %v449_v35 = vpop.permute.xlu1 %448 }
 0x32a   : > { %v451_v36 = vmul.f32 %v449_v35, %v445_v34 }
 0x32f   : > { %v533_v26 = vld [vmem:[#allocation4] sm:$0xff] }
 0x330   : > { %536 = vperm.xlu1 %924, %v533_v26  }
 0x36a   : > { %v522_v37 = vpop.f32.mrb[2].mxu0 }
 0x36b   : > { %v526_v38 = vadd.f32 %v522_v37, %v451_v36  ;;  %v815_v39 = vpop.f32.mrb[3].mxu0 }
 0x36d   : > { %527 = vst.msk [vmem:[#allocation5] sm:$0xff] %vm335_vm0, %v526_v38 }
 0x374   : > { %v532_v42 = vld [vmem:[#allocation5] sm:$0xff] }
 0x3af   : > { %v537_v40 = vpop.permute.xlu1 %536 }
 0x3b0   : > { %929 = vrcp.f32 %v537_v40 }
 0x3ba   : > { %v930_v41 = vpop.eup %929 }
 0x3bb   : > { %v540_v43 = vmul.f32 %v930_v41, %v532_v42 }
 0x3bd   : > { %825 = vmatmul.mubr.msk.f32.vlgmr.msra.gmra.mrb[0].mxu1 %vm335_vm0, %v540_v43 }
 0x490   : > { %v614_v44 = vpop.f32.mrb[0].mxu1 }
 0x491   : > { %618 = vst.msk [vmem:[%s328_s13] sm:$0xff] %vm335_vm0, %v614_v44  ;;  %v826_v45 = vpop.f32.mrb[1].mxu1 }
 0x492   : > { %1062 = shalt.err (!%p1059_p12)
}
 0x493   : > { %s1063_s30 = scalar_lea.hbm %s1441_s28, 128  ;;  %s1067_s12 = scalar_lea.hbm %s1538_s21, 256 }
 0x494   : > { %p1064_p0 = scmp.ne.s32.totalorder %s1441_s28, %s1063_s30  ;;  %p1068_p9 = scmp.lt.u32.totalorder %s1441_s28, %s1538_s21 }
 0x495   : > { %p1069_p4 = scmp.lt.u32.totalorder %s1067_s12, %s1063_s30  ;;  %p1071_p5 = scmp.lt.u32.totalorder %s1063_s30, %s1441_s28 }
 0x496   : > { %p1065_p11 = pnand %p1064_p0, %p1539_p10 }
 0x497   : > { %p1070_p2 = por %p1069_p4, %p1068_p9 }
 0x498   : > { %p1066_p1 = pneg %p1065_p11 }
 0x499   : > { %p1072_p13 = por %p1071_p5, %p1070_p2 }
 0x49b   : > { %p1073_p7 = pnand %p1072_p13, %p1066_p1 }
 0x49d   : > { %1076 = shalt.err (!%p1073_p7)
}
 0x49e   : > { %843 = dma.vmem_to_hbm [thread:$0]  (%p1539_p10), %s1443_s8, 128, %s1441_s28, %s620_s22  }
 0x49f PF: > { %s1540_s20 = sld [smem:[#allocation19_spill]]  ;;  %s1541_s29 = sld [smem:[#allocation24_spill]] }
 0x4a0   : > { %s1542_s4 = sld [smem:[#allocation21_spill]] }
 0x4a5   : > { %s646_s27 = sand.u32 1, %s1540_s20   ;;  %p1543_p3 = scmp.ne.s32.totalorder %s1541_s29, 0 }
 0x4a6   : > { %p1544_p6 = scmp.ge.s32.totalorder %s1542_s4, 2  ;;  %s647_s9 = scalar_lea.sflag [#allocation8], %s646_s27 }
 0x4a8   : > { %p860_p8 = pnand %p1544_p6, %p1543_p3 }
 0x4aa   : > { %1114 = dma.done.wait (!%p860_p8), %s647_s9, 128  }
 0x4ab   : > { %1116 = vsyncadd (!%p860_p8), %s647_s9, 4294967168  ;;  %s24_s20 = sadd.s32 1, %s1542_s4   ;;  %s1545_s6 = sld [smem:[#allocation23_spill]] }
 0x4ac   : > { %p21_p12 = scmp.ge.s32.totalorder %s24_s20, 4   ;;  %s1546_s18 = sld [smem:[#allocation20_spill]] }
 0x4ad   : > { %s1547_s19 = sld [smem:[#allocation22_spill]]  ;;  %s1548_s15 = smov %s1123_s16 }
 0x4ae   : > { %s1549_s16 = smov %s1127_s17  ;;  %23 = sbr.rel (!%p21_p12) target bundleno = 12 (0xc), region = 117 }
 0x4b1   : > { %s1550_s17 = smov %s1545_s6 }
 0x4b5   :  { %652 = vsyncpa [#allocation7], 1 }
 0x4b6   :  { %654 = vsyncpa [#allocation7 + $0x1], 1 }
 0x4b7   :  { %655 = vsyncpa [#allocation10], 1 }
 0x4b8   :  { %657 = vsyncpa [#allocation10 + $0x1], 1 }
 0x4b9   :  { %658 = vsyncpa [#allocation13], 1 }
 0x4ba   :  { %659 = vsyncpa [#allocation8], 1 }
 0x4bb   :  { %661 = vsyncpa [#allocation8 + $0x1], 1 }

</bundles_post_ra>
